<compile_context>
chip_gen: v6e
topology: v6e:2x2x1
jax: 0.10.0
libtpu: 0.0.40
codegen_flags: <defaults>
</compile_context>

<pallas_src>
import jax
import jax.numpy as jnp
from jax.experimental import pallas as pl
from jax.experimental.pallas import tpu as pltpu


def _copy_kernel(x_ref, o_ref):
    # Identity passthrough of the current tile (all the "compute" of forward).
    o_ref[...] = x_ref[...]


def _choose_lanes(total: int):
    """Pick a lane-dense row width (multiple of 128).

    Prefers a width that divides `total` exactly so no tail padding (and no
    post-kernel slice) is needed; otherwise falls back to 1024 lanes with a
    tiny (<1024-element) tail pad.
    """
    for lanes in (4096, 2048, 1024, 512, 256, 128):
        if total % lanes == 0:
            return lanes, 0
    lanes = 1024
    return lanes, (-total) % lanes


def mast3r_module_forward(x: jax.Array) -> jax.Array:
    """Identity forward of Mast3rModule, executed through a Pallas TPU kernel."""
    orig_shape = x.shape
    orig_dtype = x.dtype
    total = 1
    for d in orig_shape:
        total *= int(d)

    lanes, tail_pad = _choose_lanes(total)

    xf = x.reshape(-1)
    if tail_pad:
        xf = jnp.pad(xf, (0, tail_pad))
    rows = (total + tail_pad) // lanes
    x2d = xf.reshape(rows, lanes)

    # Dtype-aware sublane granularity: 8 for 4-byte, 16 for 2-byte, 32 for
    # 1-byte dtypes (sub-32-bit dtypes pack along sublanes).
    itemsize = jnp.dtype(orig_dtype).itemsize
    sublane = max(8, 32 // max(itemsize, 1))

    # ~2 MiB blocks: large enough to amortize the ~600-cycle per-grid-step
    # overhead (measured tiled-copy data reaches ~85% of HBM roofline at this
    # class of tile), small enough that 4x double-buffering stays inside every
    # generation's scoped-VMEM default.
    target_block_bytes = 2 * 1024 * 1024
    tile_rows = (target_block_bytes // (lanes * itemsize)) // sublane * sublane
    tile_rows = max(sublane, tile_rows)
    if rows <= tile_rows:
        tile_rows = rows  # single block; full-dim block shape is always legal

    grid = (pl.cdiv(rows, tile_rows),)

    out2d = pl.pallas_call(
        _copy_kernel,
        out_shape=jax.ShapeDtypeStruct((rows, lanes), orig_dtype),
        grid=grid,
        in_specs=[pl.BlockSpec((tile_rows, lanes), lambda i: (i, 0))],
        out_specs=pl.BlockSpec((tile_rows, lanes), lambda i: (i, 0)),
        # Identity copy with identical in/out index maps: every output tile
        # lands exactly where its input tile came from, so aliasing the HBM
        # buffers is safe and removes the separate output allocation.
        input_output_aliases={0: 0},
        compiler_params=pltpu.CompilerParams(
            dimension_semantics=("parallel",),
        ),
    )(x2d)

    out = out2d.reshape(-1)
    if tail_pad:
        out = out[:total]
    return out.reshape(orig_shape)


if __name__ == "__main__":
    key = jax.random.PRNGKey(0)
    # Small NCHW input consistent with the module's forward (any shape works).
    x = jax.random.normal(key, (2, 4, 16, 16), dtype=jnp.float32)
    x_host = jax.device_get(x)  # host copy for verification (x is donated)

    # Donate x so input_output_aliases can be honored end-to-end (zero-copy).
    fwd = jax.jit(mast3r_module_forward, donate_argnums=(0,))
    y = jax.block_until_ready(fwd(x))

    # Sanity: identity semantics — exact match against the pre-donation copy.
    assert y.shape == x_host.shape and y.dtype == x_host.dtype
    assert bool((jax.device_get(y) == x_host).all())
    print("KERNEL_OK")
</pallas_src>

<mosaic_0001>
module attributes {stable_mosaic.version = 11 : i64} {
  func.func @_copy_kernel(%arg0: i32, %arg1: memref<1x2048xf32, #tpu.memory_space<vmem>>, %arg2: memref<1x2048xf32, #tpu.memory_space<vmem>>) attributes {dimension_semantics = [#tpu.dimension_semantics<parallel>], iteration_bounds = array<i64: 1>, scalar_prefetch = 0 : i64, scratch_operands = 0 : i64, tpu.core_type = #tpu.core_type<tc>, window_params = [{transform_indices = @transform_0, window_bounds = array<i64: 1, 2048>}, {transform_indices = @transform_1, window_bounds = array<i64: 1, 2048>}]} {
    %c0 = arith.constant 0 : index
    %c0_0 = arith.constant 0 : index
    %0 = vector.load %arg1[%c0, %c0_0] : memref<1x2048xf32, #tpu.memory_space<vmem>>, vector<1x2048xf32>
    %c0_1 = arith.constant 0 : index
    %c0_2 = arith.constant 0 : index
    %1 = vector.load %arg2[%c0_1, %c0_2] : memref<1x2048xf32, #tpu.memory_space<vmem>>, vector<1x2048xf32>
    tpu.vector_store %arg2[%c0_1, %c0_2], %0 {strides = array<i32>} : memref<1x2048xf32, #tpu.memory_space<vmem>>, vector<1x2048xf32>,
    return
  }
  func.func @transform_0(%arg0: i32) -> (i32, i32) {
    %c0_i32 = arith.constant 0 : i32
    %c0_i32_0 = arith.constant 0 : i32
    return %arg0, %c0_i32 : i32, i32
  }
  func.func @transform_1(%arg0: i32) -> (i32, i32) {
    %c0_i32 = arith.constant 0 : i32
    %c0_i32_0 = arith.constant 0 : i32
    return %arg0, %c0_i32 : i32, i32
  }
}

</mosaic_0001>

<bundles_post_ra>
// kernel: mast3r_module_forward.1
= control target key start
LH: loop header
LB: loop body
LE: loop exit
PB: predicated region body
PF: predicated region fallthrough
CT: control target
= control target key end

     0   :  { %s38_s0 = inlined_call_operand.vmem [shape: f32[1,2048], index: 0, kind: input, shape index: {}, may-alias: {0,1}]   ;;  %s39_s1 = inlined_call_operand.vmem [shape: f32[1,2048], index: 1, kind: output, shape index: {}, may-alias: {0,1}]  }
   0x1   :  { %v8_v0 = vld [vmem:[%s38_s0] sm:$0xff]  ;;  %v9_v1 = vld [vmem:[%s38_s0 + $0x8] sm:$0xff] }
   0x2   :  { %10 = vst [vmem:[%s39_s1] sm:$0xff] %v8_v0  ;;  %11 = vst [vmem:[%s39_s1 + $0x8] sm:$0xff] %v9_v1 }

</bundles_post_ra>
